<compile_context>
chip_gen: v6e
topology: v6e:2x2x1
jax: 0.10.0
libtpu: 0.0.40
codegen_flags: <defaults>
</compile_context>

<pallas_src>
import jax
import jax.numpy as jnp
from jax.experimental import pallas as pl
from jax.experimental.pallas import tpu as pltpu

HID = 32
EPS = 1e-8
N_LEAVES = 4
BATCH = 8

MAX_BATCH_TILE = 2048   # rows per grid step cap (multiple of 8)
MIN_BATCH_TILE = 8

W_ROWS = 72             # packed parameter slab: rows (multiple of 8)
W_LANES = 128           # packed parameter slab: lanes (lane-dense)


def _round_up(n, m):
    return -(-n // m) * m


def hltm_kernel(x_ref, w_ref, out_ref):
    # Leaves feed their parents through ReLU in the reference model.
    x = jnp.maximum(x_ref[...].astype(jnp.float32), 0.0)        # [TB, 4]

    # Static views into the packed parameter slab (single DMA per call).
    wleaf = w_ref[0:4, 0:2 * HID]        # [4, 64]  rows 0-1: w0^T | 0 ; rows 2-3: 0 | w1^T
    b01 = w_ref[4:5, 0:2 * HID]          # [1, 64]  b0 | b1
    br = w_ref[5:6, 0:HID]               # [1, 32]
    wrt = w_ref[8:8 + 2 * HID, 0:HID]    # [64, 32] = wr^T

    # n0 / n1 fused: 4 VPU broadcast-FMAs on a 64-lane tile.  The zero padding
    # in wleaf keeps the cross terms zero, so lanes 0:32 = h_n0, 32:64 = h_n1.
    h01 = (x[:, 0:1] * wleaf[0:1, :]
           + x[:, 1:2] * wleaf[1:2, :]
           + x[:, 2:3] * wleaf[2:3, :]
           + x[:, 3:4] * wleaf[3:4, :]
           + b01)                                                # [TB, 64]

    # root: single K=64 MXU dot (instead of two K=32 dots).
    hr = jnp.dot(jnp.maximum(h01, 0.0), wrt,
                 preferred_element_type=jnp.float32) + br        # [TB, 32]

    # x = x / (||x||_2 + eps): EUP approx reciprocal + one Newton step.
    denom = jnp.sqrt(jnp.sum(hr * hr, axis=1, keepdims=True)) + EPS
    inv = pl.reciprocal(denom, approx=True)
    inv = inv * (2.0 - denom * inv)

    # Single unmasked 128-lane store per row block: [out | h_n0 | h_n1 | h_root].
    out_ref[...] = jnp.concatenate([hr * inv, h01, hr], axis=-1)


def pack_params(w0, b0, w1, b1, wr, br):
    """Pack all parameters into one lane-dense f32 slab (one input DMA)."""
    slab = jnp.zeros((W_ROWS, W_LANES), jnp.float32)
    slab = slab.at[0:2, 0:HID].set(w0.T)                 # wleaf rows 0-1 (n0)
    slab = slab.at[2:4, HID:2 * HID].set(w1.T)           # wleaf rows 2-3 (n1)
    slab = slab.at[4, 0:HID].set(b0.reshape(-1))
    slab = slab.at[4, HID:2 * HID].set(b1.reshape(-1))
    slab = slab.at[5, 0:HID].set(br.reshape(-1))
    slab = slab.at[8:8 + 2 * HID, 0:HID].set(wr.T)       # root weight^T [64, 32]
    return slab


def hltm_pallas(x, params):
    """x: [B, 4]; params in PyTorch layout (w: [out, in], b: [1, out])."""
    w0, b0, w1, b1, wr, br = params
    B = x.shape[0]

    # Batch tile: aim for >= 2 grid steps (both v7x TensorCores get work via
    # the "parallel" grid axis), cap tile size, keep a multiple of 8.
    tb = max(MIN_BATCH_TILE, _round_up(-(-B // 2), MIN_BATCH_TILE))
    tb = min(tb, MAX_BATCH_TILE)
    Bp = _round_up(B, tb)
    if Bp != B:  # remainder handling: zero-pad rows, slice them off afterwards
        x = jnp.concatenate(
            [x, jnp.zeros((Bp - B, N_LEAVES), x.dtype)], axis=0)

    wslab = pack_params(w0, b0, w1, b1, wr, br)

    slab = pl.pallas_call(
        hltm_kernel,
        out_shape=jax.ShapeDtypeStruct((Bp, 4 * HID), jnp.float32),
        grid=(Bp // tb,),
        in_specs=[
            pl.BlockSpec((tb, N_LEAVES), lambda i: (i, 0)),      # x tile
            # constant index_map -> weights stay VMEM-resident across steps
            # (single-buffering via pipeline_mode skipped intentionally; the
            # slab is only ~36 KB).
            pl.BlockSpec((W_ROWS, W_LANES), lambda i: (0, 0)),   # packed params
        ],
        out_specs=pl.BlockSpec((tb, 4 * HID), lambda i: (i, 0)),
        compiler_params=pltpu.CompilerParams(
            dimension_semantics=("parallel",)),
    )(x, wslab)
    return slab[:B]


def model_forward(x, params):
    """Returns (x_normalized, all_hs, all_inputs) like the PyTorch module."""
    slab = hltm_pallas(x, params)
    out = slab[:, 0 * HID:1 * HID]
    h0 = slab[:, 1 * HID:2 * HID]
    h1 = slab[:, 2 * HID:3 * HID]
    hr = slab[:, 3 * HID:4 * HID]

    xf = x.astype(jnp.float32)
    all_hs = {
        "l0": xf[:, 0:1], "l1": xf[:, 1:2], "l2": xf[:, 2:3], "l3": xf[:, 3:4],
        "n0": h0, "n1": h1, "root": hr,
    }
    # inputs_* recomputed here (trivial, fused by XLA) instead of extra
    # masked-store kernel outputs.
    all_inputs = {
        "n0": jnp.maximum(xf[:, 0:2], 0.0),
        "n1": jnp.maximum(xf[:, 2:4], 0.0),
        "root": jnp.maximum(slab[:, HID:3 * HID], 0.0),   # relu(h0)|relu(h1)
    }
    return out, all_hs, all_inputs


def reference_forward(x, params):
    """Pure-JAX reference mirroring the PyTorch semantics."""
    w0, b0, w1, b1, wr, br = params
    in0 = jnp.maximum(x[:, 0:2], 0.0)
    h0 = in0 @ w0.T + b0
    in1 = jnp.maximum(x[:, 2:4], 0.0)
    h1 = in1 @ w1.T + b1
    inr = jnp.concatenate([jnp.maximum(h0, 0.0), jnp.maximum(h1, 0.0)], axis=1)
    hr = inr @ wr.T + br
    nrm = jnp.sqrt(jnp.sum(hr * hr, axis=1, keepdims=True))
    return hr / (nrm + EPS), h0, h1, hr, in0, in1, inr


def init_params(key):
    k = jax.random.split(key, 6)
    # nn.Linear shapes: weight [out, in], bias (kept 2-D [1, out] for TPU).
    w0 = jax.random.normal(k[0], (HID, 2), jnp.float32) * 0.5
    b0 = jax.random.normal(k[1], (1, HID), jnp.float32) * 0.1
    w1 = jax.random.normal(k[2], (HID, 2), jnp.float32) * 0.5
    b1 = jax.random.normal(k[3], (1, HID), jnp.float32) * 0.1
    wr = jax.random.normal(k[4], (HID, 2 * HID), jnp.float32) * 0.1
    br = jax.random.normal(k[5], (1, HID), jnp.float32) * 0.1
    return (w0, b0, w1, b1, wr, br)


if __name__ == "__main__":
    key = jax.random.PRNGKey(0)
    kx, kp = jax.random.split(key)
    params = init_params(kp)

    # BATCH exercises the single-tile path; 100 exercises the multi-step grid
    # + remainder-padding path.
    for bsz in (BATCH, 100):
        x = jax.random.normal(jax.random.fold_in(kx, bsz),
                              (bsz, N_LEAVES), jnp.float32)
        out, all_hs, all_inputs = model_forward(x, params)
        out = jax.block_until_ready(out)

        ref = reference_forward(x, params)
        got = (out, all_hs["n0"], all_hs["n1"], all_hs["root"],
               all_inputs["n0"], all_inputs["n1"], all_inputs["root"])
        for g, r in zip(got, ref):
            assert jnp.allclose(g, r, atol=1e-5, rtol=1e-5), \
                "mismatch vs reference"

    # TODO(synk): computeJ (Jacobian propagation) is not part of forward(); not implemented.
    print("KERNEL_OK")
</pallas_src>

<mosaic_0001>
module attributes {stable_mosaic.version = 11 : i64} {
  func.func @hltm_kernel(%arg0: i32, %arg1: memref<8x4xf32, #tpu.memory_space<vmem>>, %arg2: memref<72x128xf32, #tpu.memory_space<vmem>>, %arg3: memref<8x128xf32, #tpu.memory_space<vmem>>) attributes {dimension_semantics = [#tpu.dimension_semantics<parallel>], iteration_bounds = array<i64: 1>, scalar_prefetch = 0 : i64, scratch_operands = 0 : i64, tpu.core_type = #tpu.core_type<tc>, window_params = [{transform_indices = @transform_0, window_bounds = array<i64: 8, 4>}, {pipeline_mode = #tpu.pipeline_mode<synchronous>, transform_indices = @transform_1, window_bounds = array<i64: 72, 128>}, {transform_indices = @transform_2, window_bounds = array<i64: 8, 128>}]} {
    %c0 = arith.constant 0 : index
    %c0_0 = arith.constant 0 : index
    %0 = vector.load %arg1[%c0, %c0_0] : memref<8x4xf32, #tpu.memory_space<vmem>>, vector<8x4xf32>
    %cst = arith.constant 0.000000e+00 : f32
    %1 = vector.broadcast %cst : f32 to vector<8x4xf32>
    %2 = arith.maximumf %0, %1 : vector<8x4xf32>
    %c0_1 = arith.constant 0 : index
    %c0_2 = arith.constant 0 : index
    %3 = vector.load %arg2[%c0_1, %c0_2] : memref<72x128xf32, #tpu.memory_space<vmem>>, vector<4x64xf32>
    %c4 = arith.constant 4 : index
    %c0_3 = arith.constant 0 : index
    %4 = vector.load %arg2[%c4, %c0_3] : memref<72x128xf32, #tpu.memory_space<vmem>>, vector<1x64xf32>
    %c5 = arith.constant 5 : index
    %c0_4 = arith.constant 0 : index
    %5 = vector.load %arg2[%c5, %c0_4] : memref<72x128xf32, #tpu.memory_space<vmem>>, vector<1x32xf32>
    %c8 = arith.constant 8 : index
    %c0_5 = arith.constant 0 : index
    %6 = vector.load %arg2[%c8, %c0_5] : memref<72x128xf32, #tpu.memory_space<vmem>>, vector<64x32xf32>
    %7 = vector.extract_strided_slice %2 {offsets = [0, 0], sizes = [8, 1], strides = [1, 1]} : vector<8x4xf32> to vector<8x1xf32>
    %8 = vector.extract_strided_slice %3 {offsets = [0, 0], sizes = [1, 64], strides = [1, 1]} : vector<4x64xf32> to vector<1x64xf32>
    %9 = vector.broadcast %7 : vector<8x1xf32> to vector<8x64xf32>
    %10 = vector.broadcast %8 : vector<1x64xf32> to vector<8x64xf32>
    %11 = arith.mulf %9, %10 : vector<8x64xf32>
    %12 = vector.extract_strided_slice %2 {offsets = [0, 1], sizes = [8, 1], strides = [1, 1]} : vector<8x4xf32> to vector<8x1xf32>
    %13 = vector.extract_strided_slice %3 {offsets = [1, 0], sizes = [1, 64], strides = [1, 1]} : vector<4x64xf32> to vector<1x64xf32>
    %14 = vector.broadcast %12 : vector<8x1xf32> to vector<8x64xf32>
    %15 = vector.broadcast %13 : vector<1x64xf32> to vector<8x64xf32>
    %16 = arith.mulf %14, %15 : vector<8x64xf32>
    %17 = arith.addf %11, %16 : vector<8x64xf32>
    %18 = vector.extract_strided_slice %2 {offsets = [0, 2], sizes = [8, 1], strides = [1, 1]} : vector<8x4xf32> to vector<8x1xf32>
    %19 = vector.extract_strided_slice %3 {offsets = [2, 0], sizes = [1, 64], strides = [1, 1]} : vector<4x64xf32> to vector<1x64xf32>
    %20 = vector.broadcast %18 : vector<8x1xf32> to vector<8x64xf32>
    %21 = vector.broadcast %19 : vector<1x64xf32> to vector<8x64xf32>
    %22 = arith.mulf %20, %21 : vector<8x64xf32>
    %23 = arith.addf %17, %22 : vector<8x64xf32>
    %24 = vector.extract_strided_slice %2 {offsets = [0, 3], sizes = [8, 1], strides = [1, 1]} : vector<8x4xf32> to vector<8x1xf32>
    %25 = vector.extract_strided_slice %3 {offsets = [3, 0], sizes = [1, 64], strides = [1, 1]} : vector<4x64xf32> to vector<1x64xf32>
    %26 = vector.broadcast %24 : vector<8x1xf32> to vector<8x64xf32>
    %27 = vector.broadcast %25 : vector<1x64xf32> to vector<8x64xf32>
    %28 = arith.mulf %26, %27 : vector<8x64xf32>
    %29 = arith.addf %23, %28 : vector<8x64xf32>
    %30 = vector.broadcast %4 : vector<1x64xf32> to vector<8x64xf32>
    %31 = arith.addf %29, %30 : vector<8x64xf32>
    %cst_6 = arith.constant 0.000000e+00 : f32
    %32 = vector.broadcast %cst_6 : f32 to vector<8x64xf32>
    %33 = arith.maximumf %31, %32 : vector<8x64xf32>
    %cst_7 = arith.constant dense<0.000000e+00> : vector<8x32xf32>
    %34 = tpu.matmul %33, %6, %cst_7 {dimension_numbers = #tpu.dot_dimension_numbers<[1], [0], [0], [1], [0, 0, 1, 1], [], []>} : vector<8x64xf32>, vector<64x32xf32>, vector<8x32xf32> -> vector<8x32xf32>
    %35 = vector.broadcast %5 : vector<1x32xf32> to vector<8x32xf32>
    %36 = arith.addf %34, %35 : vector<8x32xf32>
    %37 = arith.mulf %36, %36 : vector<8x32xf32>
    %cst_8 = arith.constant dense<0.000000e+00> : vector<8xf32>
    %38 = vector.multi_reduction <add>, %37, %cst_8 [1] : vector<8x32xf32> to vector<8xf32>
    %39 = vector.shape_cast %38 : vector<8xf32> to vector<8x1xf32>
    %40 = math.sqrt %39 : vector<8x1xf32>
    %cst_9 = arith.constant 9.99999993E-9 : f32
    %41 = vector.broadcast %cst_9 : f32 to vector<8x1xf32>
    %42 = arith.addf %40, %41 : vector<8x1xf32>
    %43 = tpu.reciprocal %42 {approx = true} : vector<8x1xf32> -> vector<8x1xf32>
    %44 = arith.mulf %42, %43 : vector<8x1xf32>
    %cst_10 = arith.constant 2.000000e+00 : f32
    %45 = vector.broadcast %cst_10 : f32 to vector<8x1xf32>
    %46 = arith.subf %45, %44 : vector<8x1xf32>
    %47 = arith.mulf %43, %46 : vector<8x1xf32>
    %48 = vector.broadcast %47 : vector<8x1xf32> to vector<8x32xf32>
    %49 = arith.mulf %36, %48 : vector<8x32xf32>
    %50 = tpu.concatenate %49, %31, %36 in 1 : vector<8x32xf32>, vector<8x64xf32>, vector<8x32xf32> -> vector<8x128xf32>
    %c0_11 = arith.constant 0 : index
    %c0_12 = arith.constant 0 : index
    %51 = vector.load %arg3[%c0_11, %c0_12] : memref<8x128xf32, #tpu.memory_space<vmem>>, vector<8x128xf32>
    tpu.vector_store %arg3[%c0_11, %c0_12], %50 {strides = array<i32>} : memref<8x128xf32, #tpu.memory_space<vmem>>, vector<8x128xf32>,
    return
  }
  func.func @transform_0(%arg0: i32) -> (i32, i32) {
    %c0_i32 = arith.constant 0 : i32
    %c0_i32_0 = arith.constant 0 : i32
    return %arg0, %c0_i32 : i32, i32
  }
  func.func @transform_1(%arg0: i32) -> (i32, i32) {
    %c0_i32 = arith.constant 0 : i32
    %c0_i32_0 = arith.constant 0 : i32
    %c0_i32_1 = arith.constant 0 : i32
    return %c0_i32, %c0_i32_0 : i32, i32
  }
  func.func @transform_2(%arg0: i32) -> (i32, i32) {
    %c0_i32 = arith.constant 0 : i32
    %c0_i32_0 = arith.constant 0 : i32
    return %arg0, %c0_i32 : i32, i32
  }
}

</mosaic_0001>

<bundles_post_ra>
// kernel: tpu_custom_call.1
= control target key start
LH: loop header
LB: loop body
LE: loop exit
PB: predicated region body
PF: predicated region fallthrough
CT: control target
= control target key end

     0   :  { %7 = vsyncpa [#allocation3], 0  ;;  %s342_s0 = inlined_call_operand.vmem [shape: f32[8,4], index: 0, kind: input, shape index: {}]   ;;  %s343_s1 = inlined_call_operand.hbm [shape: f32[72,128], index: 1, kind: input, shape index: {}]   ;;  %s344_s2 = inlined_call_operand.hbm [shape: f32[8,128], index: 2, kind: output, shape index: {}]  }
   0x1   :  { %8 = vsyncpa [#allocation4], 0  ;;  %s304_s9 = smov [#allocation2]  }
   0x2   :  { %s16_s10 = sshll.u32 %s304_s9, 4  ;;  %s17_s10 = int_to_ptr.vmem [resolvable:$true] %s16_s10 }
   0x3   :  { %s268_s11 = scalar_lea.vmem %s17_s10, 1152  ;;  %p273_p1 = scmp.lt.s32.totalorder %s17_s10, %s17_s10 }
   0x4   :  { %p269_p0 = scmp.ne.s32.totalorder %s17_s10, %s268_s11  ;;  %p274_p2 = scmp.lt.s32.totalorder %s268_s11, %s268_s11 }
   0x6   :  { %p275_p3 = por %p274_p2, %p273_p1 }
   0x8   :  { %p276_p4 = pnand %p275_p3, %p269_p0 }
   0xa   :  { %279 = shalt.err (!%p276_p4)
}
   0xb   :  { %s305_s12 = smov 128   ;;  %s306_s13 = smov 8  }
   0xc   :  { %22 = dma.hbm_to_vmem [thread:$0]  %s343_s1, 1152, %s17_s10, [#allocation3], %s305_s12, %s305_s12, %s306_s13  }
   0xd   :  { %300 = dma.done.wait [#allocation3], 1152  }
   0xe   :  { %301 = vsyncadd [#allocation3], 4294966144  ;;  %v307_v0 = vmov 0   ;;  %v308_v1 = vmov 2   ;;  %v26_v2 = vld [vmem:[%s342_s0] sm:$0xff]  ;;  %v309_v3 = vmov 0.0   ;;  %v44_v15 = vlaneseq }
   0xf   :  { %251 = vset.pattern.permute.xlu0 %v307_v0  ;;  %253 = vset.pattern.permute.xlu1 %v308_v1  ;;  %v38_v4 = vld [vmem:[#allocation2 + $0x40] sm:$0xff]  ;;  %v27_v5 = vmax.f32 %v26_v2, 0.0  ;;  %v37_v6 = vld [vmem:[#allocation2 + $0x38] sm:$0xff]  ;;  %v36_v7 = vld [vmem:[#allocation2 + $0x30] sm:$0xff]  ;;  %v310_v8 = vmov 1   ;;  %v311_v9 = vmov 3  }
  0x10   :  { %220 = vmatprep.subr.mxu0 %v309_v3  ;;  %v35_v10 = vld [vmem:[#allocation2 + $0x28] sm:$0xff]  ;;  %v34_v11 = vld [vmem:[#allocation2 + $0x20] sm:$0xff]  ;;  %v33_v12 = vld [vmem:[#allocation2 + $0x18] sm:$0xff]  ;;  %vm312_vm0 = vmmov 0   ;;  %v45_v16 = vshrl.u32 %v44_v15, 7  ;;  %vm89_vm1 = vcmask 523264  }
  0x11   :  { %221 = vmatpush3.msra.mxu0 %v38_v4  ;;  %41 = vperm.xlu0 %251, %v27_v5   ;;  %v32_v13 = vld [vmem:[#allocation2 + $0x10] sm:$0xff]  ;;  %v31_v14 = vld [vmem:[#allocation2 + $0x8] sm:$0xff]  ;;  %v28_v19 = vld [vmem:[#allocation2] sm:$0xf]  ;;  %s313_s0 = smov 32   ;;  %vm164_vm2 = vcmask 261120  }
  0x12   :  { %222 = vmatprep.subr.mxu0 %v309_v3  ;;  %60 = vperm.xlu1 %253, %v27_v5   ;;  %v46_v17 = vsub.s32 0, %v45_v16  ;;  %v55_v18 = vsub.s32 1, %v45_v16  ;;  %v65_v21 = vsub.s32 2, %v45_v16  ;;  %v75_v23 = vsub.s32 3, %v45_v16  ;;  %v208_v36 = vld [vmem:[#allocation2 + $0x4] ss:$0 sm:$0xff] }
  0x13   :  { %223 = vmatpush3.msra.mxu0 %v37_v6  ;;  %236 = vmatprep.mubr.msk.f32.mxu0 %vm312_vm0, %v309_v3  ;;  %v209_v40 = vld [vmem:[#allocation2 + $0x5] ss:$0 sm:$0xff]  ;;  %s314_s1 = smov 96   ;;  %s315_s18 = smov [#allocation5]   ;;  %vm190_vm5 = vcmask 785408  }
  0x14   :  { %224 = vmatprep.subr.mxu0 %v309_v3  ;;  %v47_v24 = vrot.slane %v28_v19, %v46_v17  ;;  %v56_v25 = vrot.slane %v28_v19, %v55_v18  ;;  %v66_v26 = vrot.slane %v28_v19, %v65_v21  ;;  %v76_v27 = vrot.slane %v28_v19, %v75_v23  ;;  %s199_s19 = sshll.u32 %s315_s18, 4  ;;  %s200_s19 = int_to_ptr.vmem [resolvable:$true] %s199_s19 }
  0x15   :  { %225 = vmatpush3.msra.mxu0 %v36_v7  ;;  %252 = vset.pattern.permute.xlu0 %v310_v8  ;;  %s280_s20 = scalar_lea.vmem %s200_s19, 128  ;;  %p285_p6 = scmp.lt.s32.totalorder %s200_s19, %s200_s19 }
  0x16   :  { %254 = vset.pattern.permute.xlu1 %v311_v9  ;;  %50 = vperm.xlu0 %252, %v27_v5   ;;  %p281_p5 = scmp.ne.s32.totalorder %s200_s19, %s280_s20  ;;  %p286_p7 = scmp.lt.s32.totalorder %s280_s20, %s280_s20 }
  0x17   :  { %70 = vperm.xlu1 %254, %v27_v5   ;;  %226 = vmatprep.subr.mxu0 %v309_v3 }
  0x18   :  { %227 = vmatpush3.msra.mxu0 %v35_v10  ;;  %p287_p8 = por %p286_p7, %p285_p6 }
  0x19   :  { %228 = vmatprep.subr.mxu0 %v309_v3 }
  0x1a   :  { %229 = vmatpush3.msra.mxu0 %v34_v11  ;;  %255 = vset.pattern.permute.xlu0 %v311_v9  ;;  %p288_p9 = pnand %p287_p8, %p281_p5 }
  0x1b   :  { %230 = vmatprep.subr.mxu0 %v309_v3 }
  0x1c   :  { %231 = vmatpush3.msra.mxu0 %v33_v12 }
  0x1d   :  { %232 = vmatprep.subr.mxu0 %v309_v3 }
  0x1e   :  { %233 = vmatpush3.msra.mxu0 %v32_v13 }
  0x1f   :  { %234 = vmatprep.subr.mxu0 %v309_v3 }
  0x20   :  { %235 = vmatpush3.msra.mxu0 %v31_v14 }
  0x8c   :  { %v42_v20 = vpop.permute.xlu0 %41 }
  0x8d   :  { %v61_v22 = vpop.permute.xlu1 %60  ;;  %v48_v30 = vmul.f32 %v47_v24, %v42_v20 }
  0x8e   :  { %v67_v32 = vmul.f32 %v66_v26, %v61_v22 }
  0x91   :  { %v51_v28 = vpop.permute.xlu0 %50 }
  0x92   :  { %v71_v29 = vpop.permute.xlu1 %70  ;;  %v57_v31 = vmul.f32 %v56_v25, %v51_v28 }
  0x93   :  { %v77_v34 = vmul.f32 %v76_v27, %v71_v29 }
  0x94   :  { %v58_v33 = vadd.f32 %v57_v31, %v48_v30 }
  0x96   :  { %v68_v35 = vadd.f32 %v67_v32, %v58_v33 }
  0x98   :  { %v78_v37 = vadd.f32 %v77_v34, %v68_v35 }
  0x9a   :  { %v83_v38 = vadd.f32 %v208_v36, %v78_v37 }
  0x9c   :  { %182 = vrot.lane.b32.xlu0 %v83_v38, %s313_s0  ;;  %v84_v39 = vmax.f32 %v83_v38, 0.0 }
  0x9e   :  { %237 = vmatmul.mubr.msk.f32.vlgmr.msra.gmra.mxu0 %vm89_vm1, %v84_v39 }
 0x10e   :  { %v183_v56 = vpop.permute.xlu0 %182 }
 0x15e   :  { %v159_v41 = vpop.f32.mrf.mxu0 }
 0x15f   :  { %v160_v42 = vadd.f32 %v209_v40, %v159_v41 }
 0x160   :  { %v238_v43 = vpop.f32.mrf.mxu0 }
 0x161   :  { %186 = vrot.lane.b32.xlu0 %v160_v42, %s314_s1  ;;  %v163_v44 = vmul.f32 %v160_v42, %v160_v42 }
 0x163   :  { %v165_v45 = vsel %vm164_vm2, %v163_v44, 0.0 }
 0x164   :  { %166 = vadd.xlane.f32.xlu1 %v165_v45 }
 0x1d3   :  { %v187_v59 = vpop.permute.xlu0 %186 }
 0x1ed   :  { %v167_v46 = vpop.xlane.xlu1 %166 }
 0x1ee   :  { %256 = vrsqrt.f32 %v167_v46  ;;  %vm170_vm3 = vcmp.eq.f32.partialorder %v167_v46, inf  ;;  %v173_v49 = vand.u32 2147483648, %v167_v46  ;;  %vm172_vm4 = vcmp.eq.f32.partialorder %v167_v46, 0.0 }
 0x1fb   :  { %v257_v47 = vpop.eup %256 }
 0x1fc   :  { %v169_v48 = vmul.f32 %v257_v47, %v167_v46 }
 0x1fe   :  { %v171_v50 = vsel %vm170_vm3, %v167_v46, %v169_v48 }
 0x1ff   :  { %v174_v51 = vsel %vm172_vm4, %v173_v49, %v171_v50 }
 0x200   :  { %v175_v52 = vadd.f32 1e-08, %v174_v51 }
 0x202   :  { %258 = vrcp.f32 %v175_v52 }
 0x20f   :  { %v259_v53 = vpop.eup %258 }
 0x210   :  { %v177_v54 = vmul.f32 %v259_v53, %v175_v52 }
 0x212   :  { %v178_v55 = vsub.f32 2.0, %v177_v54 }
 0x214   :  { %v179_v57 = vmul.f32 %v259_v53, %v178_v55 }
 0x216   :  { %v180_v58 = vmul.f32 %v179_v57, %v160_v42 }
 0x218   :  { %v189_v60 = vsel %vm164_vm2, %v180_v58, %v183_v56 }
 0x219   :  { %v191_v61 = vsel %vm190_vm5, %v189_v60, %v187_v59 }
 0x21a   :  { %192 = vst [vmem:[#allocation5] sm:$0xff] %v191_v61 }
 0x21b   :  { %291 = shalt.err (!%p288_p9)
}
 0x21c   :  { %202 = dma.vmem_to_hbm [thread:$0]  %s200_s19, 128, %s344_s2, [#allocation4]  }
 0x21d   :  { %302 = dma.done.wait [#allocation4], 128  }
 0x21e   :  { %303 = vsyncadd [#allocation4], 4294967168 }
 0x21f   :  { %206 = vsyncpa [#allocation3], 1 }
 0x220   :  { %207 = vsyncpa [#allocation4], 1 }

</bundles_post_ra>
